<compile_context>
chip_gen: v7x
topology: tpu7x:2x2x1
jax: 0.10.0
libtpu: 0.0.40
codegen_flags: <defaults>
</compile_context>

<pallas_src>
import jax
import jax.numpy as jnp
from jax.experimental import pallas as pl
from jax.experimental.pallas import tpu as pltpu


def _vmem_capacity_bytes():
    try:
        return int(pltpu.get_tpu_info().vmem_capacity_bytes)
    except Exception:
        return 128 * 1024 * 1024  # conservative default (v5e/v6e class)


def _pick_tile(dim, align, cap):
    """Full dim if it fits the cap, else the largest align-multiple <= cap."""
    if dim <= cap:
        return dim
    return max((cap // align) * align, align)


def scaling_kernel(a_ref, b_ref, x_ref, o_ref):
    # a_ref/b_ref: (BR, 1) per-row multiplier/offset; x_ref/o_ref: (BR, BC) tiles.
    o_ref[...] = (x_ref[...] * a_ref[...] + b_ref[...]).astype(o_ref.dtype)


def scaling_layer(x, shift, scale, *, donate_input=False):
    """(x - shift[None,:,None,None]) / scale[None,:,None,None] for NCHW x."""
    N, C, H, W = x.shape
    assert shift.shape == (C,) and scale.shape == (C,)

    # Fold the divide into a multiply-add, computed once on C scalars.
    a = (1.0 / scale).astype(jnp.float32)
    b = (-shift / scale).astype(jnp.float32)

    R, HW = N * C, H * W
    xf = x.reshape(R, HW)                    # lane-dense 2D slab
    a_col = jnp.tile(a, N).reshape(R, 1)     # row r -> channel r % C
    b_col = jnp.tile(b, N).reshape(R, 1)

    itemsize = jnp.dtype(x.dtype).itemsize
    row_align = 8 * max(4 // itemsize, 1)    # packed-sublane row granularity

    # Generation-aware per-buffer block budget (x~4 when double-buffered in+out).
    vmem_cap = _vmem_capacity_bytes()
    if vmem_cap <= 64 * 1024 * 1024:         # v7x-class: 64 MiB VMEM per TC
        block_bytes = 6 * 1024 * 1024
        vmem_limit = 40 * 1024 * 1024
    else:                                    # v5e / v6e: 128 MiB VMEM
        block_bytes = 8 * 1024 * 1024
        vmem_limit = 80 * 1024 * 1024

    # Lane tile: biggest 128-multiple (or the full H*W row) that still leaves
    # room for at least `row_align` rows inside the byte budget.
    bc_cap = max(block_bytes // (row_align * itemsize), 128)
    bc = _pick_tile(HW, 128, bc_cap)
    # Row tile: biggest dtype-aligned row count inside the remaining budget.
    max_rows = max(block_bytes // (bc * itemsize), row_align)
    br = _pick_tile(R, row_align, max_rows)

    # Keep >=2 grid blocks for sizeable inputs so v7x's two TensorCores both
    # get work (harmless extra step on 1-TC chips); tiny inputs stay 1 block.
    total_bytes = R * HW * itemsize
    if total_bytes >= 2 * 1024 * 1024 and pl.cdiv(R, br) * pl.cdiv(HW, bc) < 2:
        if R >= 2 * row_align:
            br = max(((R // 2) // row_align) * row_align, row_align)
        elif HW >= 256:
            bc = max(((HW // 2) // 128) * 128, 128)

    grid = (pl.cdiv(R, br), pl.cdiv(HW, bc))  # tail blocks masked by Pallas

    # Inner grid axis = lane tiles: coefficient block index is constant across
    # it, so the (br, 1) columns are fetched once per row-block, not per tile.
    row_spec = pl.BlockSpec((br, 1), lambda r, t: (r, 0))
    x_spec = pl.BlockSpec((br, bc), lambda r, t: (r, t))

    out = pl.pallas_call(
        scaling_kernel,
        out_shape=jax.ShapeDtypeStruct((R, HW), x.dtype),
        grid=grid,
        in_specs=[row_spec, row_spec, x_spec],
        out_specs=x_spec,
        input_output_aliases=({2: 0} if donate_input else {}),
        compiler_params=pltpu.CompilerParams(
            dimension_semantics=("parallel", "parallel"),
            vmem_limit_bytes=vmem_limit,
        ),
    )(a_col, b_col, xf)
    return out.reshape(N, C, H, W)


if __name__ == "__main__":
    # Buffers from the module's __init__ (deterministic, no checkpoint load).
    shift = jnp.array([-0.030, -0.088, -0.188], dtype=jnp.float32)
    scale = jnp.array([0.458, 0.448, 0.450], dtype=jnp.float32)

    # Small deterministic input consistent with forward: NCHW, C must be 3.
    key = jax.random.PRNGKey(0)
    x = jax.random.normal(key, (2, 3, 16, 16), dtype=jnp.float32)

    out = scaling_layer(x, shift, scale)
    out = jax.block_until_ready(out)

    # Reference semantics: (inp - shift[None,:,None,None]) / scale[None,:,None,None]
    ref = (x - shift[None, :, None, None]) / scale[None, :, None, None]
    assert out.shape == x.shape and out.dtype == x.dtype
    assert jnp.allclose(out, ref, rtol=1e-6, atol=1e-6)

    print("KERNEL_OK")
</pallas_src>

<mosaic_0001>
module attributes {stable_mosaic.version = 11 : i64} {
  func.func @scaling_kernel(%arg0: i32, %arg1: i32, %arg2: memref<6x1xf32, #tpu.memory_space<vmem>>, %arg3: memref<6x1xf32, #tpu.memory_space<vmem>>, %arg4: memref<6x256xf32, #tpu.memory_space<vmem>>, %arg5: memref<6x256xf32, #tpu.memory_space<vmem>>) attributes {dimension_semantics = [#tpu.dimension_semantics<parallel>, #tpu.dimension_semantics<parallel>], iteration_bounds = array<i64: 1, 1>, scalar_prefetch = 0 : i64, scratch_operands = 0 : i64, tpu.core_type = #tpu.core_type<tc>, window_params = [{transform_indices = @transform_0, window_bounds = array<i64: 6, 1>}, {transform_indices = @transform_1, window_bounds = array<i64: 6, 1>}, {transform_indices = @transform_2, window_bounds = array<i64: 6, 256>}, {transform_indices = @transform_3, window_bounds = array<i64: 6, 256>}]} {
    %c0 = arith.constant 0 : index
    %c0_0 = arith.constant 0 : index
    %0 = vector.load %arg4[%c0, %c0_0] : memref<6x256xf32, #tpu.memory_space<vmem>>, vector<6x256xf32>
    %c0_1 = arith.constant 0 : index
    %c0_2 = arith.constant 0 : index
    %1 = vector.load %arg2[%c0_1, %c0_2] : memref<6x1xf32, #tpu.memory_space<vmem>>, vector<6x1xf32>
    %2 = vector.broadcast %1 : vector<6x1xf32> to vector<6x256xf32>
    %3 = arith.mulf %0, %2 : vector<6x256xf32>
    %c0_3 = arith.constant 0 : index
    %c0_4 = arith.constant 0 : index
    %4 = vector.load %arg3[%c0_3, %c0_4] : memref<6x1xf32, #tpu.memory_space<vmem>>, vector<6x1xf32>
    %5 = vector.broadcast %4 : vector<6x1xf32> to vector<6x256xf32>
    %6 = arith.addf %3, %5 : vector<6x256xf32>
    %c0_5 = arith.constant 0 : index
    %c0_6 = arith.constant 0 : index
    %7 = vector.load %arg5[%c0_5, %c0_6] : memref<6x256xf32, #tpu.memory_space<vmem>>, vector<6x256xf32>
    tpu.vector_store %arg5[%c0_5, %c0_6], %6 {strides = array<i32>} : memref<6x256xf32, #tpu.memory_space<vmem>>, vector<6x256xf32>,
    return
  }
  func.func @transform_0(%arg0: i32, %arg1: i32) -> (i32, i32) {
    %c0_i32 = arith.constant 0 : i32
    %c0_i32_0 = arith.constant 0 : i32
    return %arg0, %c0_i32 : i32, i32
  }
  func.func @transform_1(%arg0: i32, %arg1: i32) -> (i32, i32) {
    %c0_i32 = arith.constant 0 : i32
    %c0_i32_0 = arith.constant 0 : i32
    return %arg0, %c0_i32 : i32, i32
  }
  func.func @transform_2(%arg0: i32, %arg1: i32) -> (i32, i32) {
    %c0_i32 = arith.constant 0 : i32
    return %arg0, %arg1 : i32, i32
  }
  func.func @transform_3(%arg0: i32, %arg1: i32) -> (i32, i32) {
    %c0_i32 = arith.constant 0 : i32
    return %arg0, %arg1 : i32, i32
  }
}

</mosaic_0001>

<bundles_post_ra>
// kernel: tpu_custom_call.1
= control target key start
LH: loop header
LB: loop body
LE: loop exit
PB: predicated region body
PF: predicated region fallthrough
CT: control target
= control target key end

     0   :  { %8 = vsyncpa [#allocation3], 0  ;;  %s259_s0 = inlined_call_operand.hbm [shape: f32[6,1], index: 0, kind: input, shape index: {}]   ;;  %s260_s1 = inlined_call_operand.hbm [shape: f32[6,1], index: 1, kind: input, shape index: {}]   ;;  %s261_s2 = inlined_call_operand.hbm [shape: f32[6,256], index: 2, kind: input, shape index: {}]   ;;  %s262_s3 = inlined_call_operand.hbm [shape: f32[6,256], index: 3, kind: output, shape index: {}]  }
   0x1   :  { %9 = vsyncpa [#allocation6], 0 }
   0x2   :  { %10 = vsyncpa [#allocation4], 0  ;;  %s186_s12 = smov [#allocation5]   ;;  %s187_s14 = smov [#allocation2]  }
   0x3   :  { %s27_s13 = sshll.u32 %s186_s12, 4  ;;  %s17_s15 = sshll.u32 %s187_s14, 4  ;;  %s28_s13 = int_to_ptr.vmem [resolvable:$true] %s27_s13  ;;  %s18_s15 = int_to_ptr.vmem [resolvable:$true] %s17_s15 }
   0x4   :  { %s92_s18 = scalar_lea.hbm %s260_s1, 128 }
   0x5   :  { %p93_p0 = scmp.ne.s32.totalorder %s260_s1, %s92_s18  ;;  %p96_p1 = scmp.lt.u32.totalorder %s92_s18, %s260_s1 }
   0x7   :  { %p98_p2 = pnand %p96_p1, %p93_p0 }
   0x9   :  { %101 = shalt.err (!%p98_p2)
}
   0xa   :  { %s102_s23 = scalar_lea.vmem %s28_s13, 128  ;;  %p107_p4 = scmp.lt.s32.totalorder %s28_s13, %s28_s13 }
   0xb   :  { %p103_p3 = scmp.ne.s32.totalorder %s28_s13, %s102_s23  ;;  %p108_p5 = scmp.lt.s32.totalorder %s102_s23, %s102_s23 }
   0xd   :  { %p109_p6 = por %p108_p5, %p107_p4 }
   0xf   :  { %p110_p7 = pnand %p109_p6, %p103_p3 }
  0x11   :  { %113 = shalt.err (!%p110_p7)
}
  0x12   :  { %30 = dma.hbm_to_vmem [thread:$0]  %s260_s1, 128, %s28_s13, [#allocation6]  }
  0x13   :  { %s114_s28 = scalar_lea.hbm %s259_s0, 128 }
  0x14   :  { %p115_p8 = scmp.ne.s32.totalorder %s259_s0, %s114_s28  ;;  %p118_p9 = scmp.lt.u32.totalorder %s114_s28, %s259_s0 }
  0x16   :  { %p120_p10 = pnand %p118_p9, %p115_p8 }
  0x18   :  { %123 = shalt.err (!%p120_p10)
}
  0x19   :  { %s124_s6 = scalar_lea.vmem %s18_s15, 128  ;;  %p129_p12 = scmp.lt.s32.totalorder %s18_s15, %s18_s15 }
  0x1a   :  { %p125_p11 = scmp.ne.s32.totalorder %s18_s15, %s124_s6  ;;  %p130_p13 = scmp.lt.s32.totalorder %s124_s6, %s124_s6 }
  0x1c   :  { %p131_p0 = por %p130_p13, %p129_p12 }
  0x1e   :  { %p132_p1 = pnand %p131_p0, %p125_p11 }
  0x20   :  { %135 = shalt.err (!%p132_p1)
}
  0x21   :  { %20 = dma.hbm_to_vmem [thread:$0]  %s259_s0, 128, %s18_s15, [#allocation3]  }
  0x22   :  { %s188_s8 = smov [#allocation7]   ;;  %s136_s12 = scalar_lea.hbm %s261_s2, 256 }
  0x23   :  { %s37_s9 = sshll.u32 %s188_s8, 4  ;;  %p137_p2 = scmp.ne.s32.totalorder %s261_s2, %s136_s12  ;;  %s38_s9 = int_to_ptr.vmem [resolvable:$true] %s37_s9 }
  0x24   :  { %p140_p3 = scmp.lt.u32.totalorder %s136_s12, %s261_s2 }
  0x26   :  { %p142_p4 = pnand %p140_p3, %p137_p2 }
  0x28   :  { %145 = shalt.err (!%p142_p4)
}
  0x29   :  { %s146_s18 = scalar_lea.vmem %s38_s9, 256  ;;  %p151_p6 = scmp.lt.s32.totalorder %s38_s9, %s38_s9 }
  0x2a   :  { %p147_p5 = scmp.ne.s32.totalorder %s38_s9, %s146_s18  ;;  %p152_p7 = scmp.lt.s32.totalorder %s146_s18, %s146_s18 }
  0x2c   :  { %p153_p8 = por %p152_p7, %p151_p6 }
  0x2e   :  { %p154_p9 = pnand %p153_p8, %p147_p5 }
  0x30   :  { %157 = shalt.err (!%p154_p9)
}
  0x31   :  { %40 = dma.hbm_to_vmem [thread:$0]  %s261_s2, 256, %s38_s9, [#allocation6]  }
  0x32   :  { %180 = dma.done.wait [#allocation3], 128  }
  0x33   :  { %181 = vsyncadd [#allocation3], 4294967168 }
  0x34   :  { %182 = dma.done.wait [#allocation6], 384  }
  0x35   :  { %183 = vsyncadd [#allocation6], 4294966912  ;;  %v189_v0 = vmov 0   ;;  %v52_v1 = vld [vmem:[#allocation2] sm:$0x3f]  ;;  %s190_s19 = smov [#allocation8]  }
  0x36   :  { %91 = vset.pattern.permute.xlu0 %v189_v0  ;;  %v60_v2 = vld [vmem:[#allocation5] sm:$0x3f]  ;;  %v50_v4 = vld [vmem:[#allocation7] sm:$0x3f]  ;;  %v51_v5 = vld [vmem:[#allocation7 + $0x8] sm:$0x3f] }
  0x37   :  { %55 = vperm.xlu0 %91, %v52_v1   ;;  %s76_s20 = sshll.u32 %s190_s19, 4  ;;  %s77_s20 = int_to_ptr.vmem [resolvable:$true] %s76_s20 }
  0x38   :  { %s158_s2 = scalar_lea.vmem %s77_s20, 256  ;;  %p163_p11 = scmp.lt.s32.totalorder %s77_s20, %s77_s20 }
  0x39   :  { %p159_p10 = scmp.ne.s32.totalorder %s77_s20, %s158_s2  ;;  %p164_p12 = scmp.lt.s32.totalorder %s158_s2, %s158_s2 }
  0x3b   :  { %63 = vperm.xlu0 %91, %v60_v2   ;;  %p165_p13 = por %p164_p12, %p163_p11 }
  0x3d   :  { %p166_p0 = pnand %p165_p13, %p159_p10 }
  0xb6   :  { %v56_v3 = vpop.permute.xlu0 %55 }
  0xb7   :  { %v58_v6 = vmul.f32 %v56_v3, %v50_v4  ;;  %v59_v7 = vmul.f32 %v56_v3, %v51_v5 }
  0xba   :  { %v64_v8 = vpop.permute.xlu0 %63 }
  0xbb   :  { %v66_v9 = vadd.f32 %v64_v8, %v58_v6  ;;  %v67_v10 = vadd.f32 %v64_v8, %v59_v7 }
  0xbd   :  { %68 = vst [vmem:[#allocation8] sm:$0x3f] %v66_v9  ;;  %69 = vst [vmem:[#allocation8 + $0x8] sm:$0x3f] %v67_v10 }
  0xbe   :  { %169 = shalt.err (!%p166_p0)
}
  0xbf   :  { %s170_s23 = scalar_lea.hbm %s262_s3, 256 }
  0xc0   :  { %p171_p1 = scmp.ne.s32.totalorder %s262_s3, %s170_s23  ;;  %p174_p2 = scmp.lt.u32.totalorder %s170_s23, %s262_s3 }
  0xc2   :  { %p176_p3 = pnand %p174_p2, %p171_p1 }
  0xc4   :  { %179 = shalt.err (!%p176_p3)
}
  0xc5   :  { %79 = dma.vmem_to_hbm [thread:$0]  %s77_s20, 256, %s262_s3, [#allocation4]  }
  0xc6   :  { %184 = dma.done.wait [#allocation4], 256  }
  0xc7   :  { %185 = vsyncadd [#allocation4], 4294967040 }
  0xc8   :  { %83 = vsyncpa [#allocation3], 1 }
  0xc9   :  { %84 = vsyncpa [#allocation6], 1 }
  0xca   :  { %85 = vsyncpa [#allocation4], 1 }

</bundles_post_ra>
